<compile_context>
chip_gen: v7x
topology: tpu7x:2x2x1
jax: 0.10.0
libtpu: 0.0.40
codegen_flags: <defaults>
</compile_context>

<pallas_src>
import functools

import jax
import jax.numpy as jnp
from jax.experimental import pallas as pl
from jax.experimental.pallas import tpu as pltpu


def _ddpg_critic_kernel(split, x_ref, wp_ref, bp_ref, w3_ref, b3_ref,
                        w5a_ref, w5b_ref, b5_ref, out_ref):
    # x_ref: (K, TILE_B) bf16 — features on sublanes, batch on lanes.
    x = x_ref[...]

    # Fused fc1 / fc6 / fc2: one block-diagonal MXU pass, f32 accumulate.
    h = jnp.dot(wp_ref[...], x, preferred_element_type=jnp.float32) + bp_ref[...]

    # fc3 on concat([fc1(y), fc6(cat(a))]) == top `split` rows of h.
    z = jnp.dot(w3_ref[...], h[:split, :].astype(jnp.bfloat16),
                preferred_element_type=jnp.float32) + b3_ref[...]
    z = jnp.maximum(z, 0.0)

    # fc2 output == bottom `hidden` rows of h (ReLU in f32).
    m = jnp.maximum(h[split:, :], 0.0)

    # fc5 with output_dim == 1: VPU multiply + XLU sublane reduce; the result
    # is lane-dense (1, TILE_B) so the store is a full vst, not a masked one.
    q = jnp.sum(z * w5a_ref[...] + m * w5b_ref[...], axis=0, keepdims=True)
    out_ref[...] = q + b5_ref[...]


@functools.partial(jax.jit, static_argnames=("split", "tile_b"))
def ddpg_critic_forward(y, a_flat, packed, *, split, tile_b=512):
    """y: (B, obs_total) f32, a_flat: (B, device_num*act_em) f32.
    Returns the flat (B,) critic output (output_dim == 1), i.e. the
    torch.cat(out_put) of the reference forward."""
    B = y.shape[0]
    x = jnp.concatenate([y, a_flat], axis=1)                   # (B, K)
    K = x.shape[1]
    b_pad = pl.cdiv(B, tile_b) * tile_b
    # Transpose + pad in the wrapper (free layout plumbing): batch -> lanes.
    xT = jnp.pad(x.astype(jnp.bfloat16).T, ((0, 0), (0, b_pad - B)))

    wp, bp = packed["wp"], packed["bp"]
    w3, b3 = packed["w3"], packed["b3"]
    w5a, w5b, b5 = packed["w5a"], packed["w5b"], packed["b5"]

    def resident(shape):
        # Full block, same block index every grid step -> stays in VMEM.
        return pl.BlockSpec(shape, lambda i: (0, 0))

    grid_spec = pltpu.PrefetchScalarGridSpec(
        num_scalar_prefetch=0,
        grid=(b_pad // tile_b,),
        in_specs=[
            pl.BlockSpec((K, tile_b), lambda i: (0, i)),       # activations, batch-tiled
            resident(wp.shape), resident(bp.shape),
            resident(w3.shape), resident(b3.shape),
            resident(w5a.shape), resident(w5b.shape), resident(b5.shape),
        ],
        out_specs=pl.BlockSpec((1, tile_b), lambda i: (0, i)),
    )
    out = pl.pallas_call(
        functools.partial(_ddpg_critic_kernel, split),
        out_shape=jax.ShapeDtypeStruct((1, b_pad), jnp.float32),
        grid_spec=grid_spec,
        # Batch axis is embarrassingly parallel -> shards across both TCs on
        # v7x; harmless on single-TC v5e/v6e.
        # NOTE: per-tile VMEM is ~K*tile_b*2B double-buffered (tens of KiB at
        # tile_b=512); raise vmem_limit_bytes only if tile_b is pushed far
        # higher (mind v7x's 64 MiB VMEM).
        compiler_params=pltpu.CompilerParams(
            dimension_semantics=("parallel",),
        ),
    )(xT, wp, bp, w3, b3, w5a, w5b, b5)
    return out[0, :B]


def init_params(key, obs_total, act_em, dev_act, hidden_dim, output_dim):
    """PyTorch-style uniform(-1/sqrt(fan_in), 1/sqrt(fan_in)) Linear init."""
    def linear(k, fan_in, fan_out):
        kw, kb = jax.random.split(k)
        bound = 1.0 / jnp.sqrt(fan_in)
        w = jax.random.uniform(kw, (fan_out, fan_in), jnp.float32, -bound, bound)
        b = jax.random.uniform(kb, (fan_out,), jnp.float32, -bound, bound)
        return w, b

    k1, k2, k3, k5, k6 = jax.random.split(key, 5)
    w1, b1 = linear(k1, obs_total, obs_total)               # fc1
    w2, b2 = linear(k2, act_em, hidden_dim)                 # fc2
    w3, b3 = linear(k3, obs_total + act_em, hidden_dim)     # fc3
    w5, b5 = linear(k5, hidden_dim * 2, output_dim)         # fc5
    w6, b6 = linear(k6, dev_act, act_em)                    # fc6
    # fc4 exists in __init__ but is never used in forward -> omitted.
    return {"w1": w1, "b1": b1, "w2": w2, "b2": b2, "w3": w3, "b3": b3,
            "w5": w5, "b5": b5, "w6": w6, "b6": b6}


def pack_params(full, *, obs_total, act_em, dev_act, hidden_dim, index):
    """Pack fc1/fc6/fc2 block-diagonally (fc2 wired to the a[index] columns of
    a_flat), split fc5 into its z/m halves, cast matmul operands to bf16."""
    O, E, H, DA = obs_total, act_em, hidden_dim, dev_act
    assert full["w5"].shape[0] == 1, "fc5 reduce path assumes output_dim == 1"
    # TODO(synk): output_dim > 1 would replace the fc5 sublane-reduce with a
    # (output_dim, 2H) MXU dot; the DDPG critic always uses output_dim == 1.
    K = O + DA
    N = O + E + H
    wp = jnp.zeros((N, K), jnp.float32)
    wp = wp.at[:O, :O].set(full["w1"])                      # fc1 on y
    wp = wp.at[O:O + E, O:O + DA].set(full["w6"])           # fc6 on cat(a)
    col = O + index * E
    wp = wp.at[O + E:, col:col + E].set(full["w2"])         # fc2 on a[index]
    bp = jnp.concatenate([full["b1"], full["b6"], full["b2"]])[:, None]
    return {
        "wp": wp.astype(jnp.bfloat16), "bp": bp,
        "w3": full["w3"].astype(jnp.bfloat16), "b3": full["b3"][:, None],
        "w5a": full["w5"][0, :H][:, None], "w5b": full["w5"][0, H:][:, None],
        "b5": full["b5"][:, None],
    }


def reference_forward(y, a_flat, index, full, act_em):
    """Pure-JAX f32 replica of the PyTorch forward."""
    a_idx = a_flat[:, index * act_em:(index + 1) * act_em]
    y1 = y @ full["w1"].T + full["b1"]
    p = a_flat @ full["w6"].T + full["b6"]
    x = a_idx @ full["w2"].T + full["b2"]
    z = jnp.maximum(jnp.concatenate([y1, p], -1) @ full["w3"].T + full["b3"], 0.0)
    m = jnp.maximum(x, 0.0)
    out = jnp.concatenate([z, m], -1) @ full["w5"].T + full["b5"]
    return out.reshape(-1)


def reference_forward_matched(y, a_flat, index, full, act_em):
    """Reference using the same bf16-operand / f32-accumulate dots as the kernel."""
    bf = jnp.bfloat16

    def dot(a, w):
        return jnp.dot(a.astype(bf), w.T.astype(bf),
                       preferred_element_type=jnp.float32)

    a_idx = a_flat[:, index * act_em:(index + 1) * act_em]
    y1 = dot(y, full["w1"]) + full["b1"]
    p = dot(a_flat, full["w6"]) + full["b6"]
    x = dot(a_idx, full["w2"]) + full["b2"]
    z = jnp.maximum(dot(jnp.concatenate([y1, p], -1), full["w3"]) + full["b3"], 0.0)
    m = jnp.maximum(x, 0.0)
    out = jnp.concatenate([z, m], -1) @ full["w5"].T + full["b5"]
    return out.reshape(-1)


if __name__ == "__main__":
    # Small synthetic "args" consistent with the module's __init__.
    neighbors_num = 3
    task_em_size = 4
    device_num = 2
    act_em_size = 8
    hidden_dim = 32
    output_dim = 1
    batch = 2
    index = 1

    obs_piece0 = neighbors_num * 3 + 3                      # i[0] pieces (12)
    obs_piece1 = task_em_size                               # i[1] pieces (4)
    obs_total = (obs_piece0 + obs_piece1) * device_num      # 32
    dev_act = device_num * act_em_size                      # 16

    key = jax.random.PRNGKey(0)
    k_obs0, k_obs1, k_act, k_par = jax.random.split(key, 4)

    obs_p0 = jax.random.normal(k_obs0, (batch, device_num, obs_piece0), jnp.float32)
    obs_p1 = jax.random.normal(k_obs1, (batch, device_num, obs_piece1), jnp.float32)
    actions = jax.random.normal(k_act, (batch, device_num, act_em_size), jnp.float32)

    # Glue reproducing the torch.cat structure of the forward.
    x1 = obs_p0.reshape(batch, -1)                          # cat([i[0] for i in o])
    x2 = obs_p1.reshape(batch, -1)                          # cat([i[1] for i in o])
    y = jnp.concatenate([x1, x2], axis=-1)                  # (B, obs_total)
    a_flat = actions.reshape(batch, -1)                     # cat(a) (B, dev*act_em)

    full = init_params(k_par, obs_total, act_em_size, dev_act,
                       hidden_dim, output_dim)
    packed = pack_params(full, obs_total=obs_total, act_em=act_em_size,
                         dev_act=dev_act, hidden_dim=hidden_dim, index=index)

    out = ddpg_critic_forward(y, a_flat, packed,
                              split=obs_total + act_em_size, tile_b=512)
    out = jax.block_until_ready(out)
    assert out.shape == (batch * output_dim,)

    ref_bf16 = reference_forward_matched(y, a_flat, index, full, act_em_size)
    ref_f32 = reference_forward(y, a_flat, index, full, act_em_size)
    assert jnp.allclose(out, ref_bf16, atol=1e-3, rtol=1e-3), (out, ref_bf16)
    assert jnp.allclose(out, ref_f32, atol=5e-2, rtol=5e-2), (out, ref_f32)

    print("KERNEL_OK")
</pallas_src>

<mosaic_0001>
module attributes {stable_mosaic.version = 11 : i64} {
  func.func @_ddpg_critic_kernel(%arg0: i32, %arg1: memref<48x512xbf16, #tpu.memory_space<vmem>>, %arg2: memref<72x48xbf16, #tpu.memory_space<vmem>>, %arg3: memref<72x1xf32, #tpu.memory_space<vmem>>, %arg4: memref<32x40xbf16, #tpu.memory_space<vmem>>, %arg5: memref<32x1xf32, #tpu.memory_space<vmem>>, %arg6: memref<32x1xf32, #tpu.memory_space<vmem>>, %arg7: memref<32x1xf32, #tpu.memory_space<vmem>>, %arg8: memref<1x1xf32, #tpu.memory_space<vmem>>, %arg9: memref<1x512xf32, #tpu.memory_space<vmem>>) attributes {dimension_semantics = [#tpu.dimension_semantics<parallel>], iteration_bounds = array<i64: 1>, scalar_prefetch = 0 : i64, scratch_operands = 0 : i64, tpu.core_type = #tpu.core_type<tc>, window_params = [{transform_indices = @transform_0, window_bounds = array<i64: 48, 512>}, {pipeline_mode = #tpu.pipeline_mode<synchronous>, transform_indices = @transform_1, window_bounds = array<i64: 72, 48>}, {pipeline_mode = #tpu.pipeline_mode<synchronous>, transform_indices = @transform_2, window_bounds = array<i64: 72, 1>}, {pipeline_mode = #tpu.pipeline_mode<synchronous>, transform_indices = @transform_3, window_bounds = array<i64: 32, 40>}, {pipeline_mode = #tpu.pipeline_mode<synchronous>, transform_indices = @transform_4, window_bounds = array<i64: 32, 1>}, {pipeline_mode = #tpu.pipeline_mode<synchronous>, transform_indices = @transform_5, window_bounds = array<i64: 32, 1>}, {pipeline_mode = #tpu.pipeline_mode<synchronous>, transform_indices = @transform_6, window_bounds = array<i64: 32, 1>}, {pipeline_mode = #tpu.pipeline_mode<synchronous>, transform_indices = @transform_7, window_bounds = array<i64: 1, 1>}, {transform_indices = @transform_8, window_bounds = array<i64: 1, 512>}]} {
    %c0 = arith.constant 0 : index
    %c0_0 = arith.constant 0 : index
    %0 = vector.load %arg1[%c0, %c0_0] : memref<48x512xbf16, #tpu.memory_space<vmem>>, vector<48x512xbf16>
    %c0_1 = arith.constant 0 : index
    %c0_2 = arith.constant 0 : index
    %1 = vector.load %arg2[%c0_1, %c0_2] : memref<72x48xbf16, #tpu.memory_space<vmem>>, vector<72x48xbf16>
    %cst = arith.constant dense<0.000000e+00> : vector<72x512xf32>
    %2 = tpu.matmul %1, %0, %cst {dimension_numbers = #tpu.dot_dimension_numbers<[1], [0], [0], [1], [0, 0, 1, 1], [], []>} : vector<72x48xbf16>, vector<48x512xbf16>, vector<72x512xf32> -> vector<72x512xf32>
    %c0_3 = arith.constant 0 : index
    %c0_4 = arith.constant 0 : index
    %3 = vector.load %arg3[%c0_3, %c0_4] : memref<72x1xf32, #tpu.memory_space<vmem>>, vector<72x1xf32>
    %4 = vector.broadcast %3 : vector<72x1xf32> to vector<72x512xf32>
    %5 = arith.addf %2, %4 : vector<72x512xf32>
    %c0_5 = arith.constant 0 : index
    %c0_6 = arith.constant 0 : index
    %6 = vector.load %arg4[%c0_5, %c0_6] : memref<32x40xbf16, #tpu.memory_space<vmem>>, vector<32x40xbf16>
    %7 = vector.extract_strided_slice %5 {offsets = [0, 0], sizes = [40, 512], strides = [1, 1]} : vector<72x512xf32> to vector<40x512xf32>
    %8 = arith.truncf %7 : vector<40x512xf32> to vector<40x512xbf16>
    %cst_7 = arith.constant dense<0.000000e+00> : vector<32x512xf32>
    %9 = tpu.matmul %6, %8, %cst_7 {dimension_numbers = #tpu.dot_dimension_numbers<[1], [0], [0], [1], [0, 0, 1, 1], [], []>} : vector<32x40xbf16>, vector<40x512xbf16>, vector<32x512xf32> -> vector<32x512xf32>
    %c0_8 = arith.constant 0 : index
    %c0_9 = arith.constant 0 : index
    %10 = vector.load %arg5[%c0_8, %c0_9] : memref<32x1xf32, #tpu.memory_space<vmem>>, vector<32x1xf32>
    %11 = vector.broadcast %10 : vector<32x1xf32> to vector<32x512xf32>
    %12 = arith.addf %9, %11 : vector<32x512xf32>
    %cst_10 = arith.constant 0.000000e+00 : f32
    %13 = vector.broadcast %cst_10 : f32 to vector<32x512xf32>
    %14 = arith.maximumf %12, %13 : vector<32x512xf32>
    %15 = vector.extract_strided_slice %5 {offsets = [40, 0], sizes = [32, 512], strides = [1, 1]} : vector<72x512xf32> to vector<32x512xf32>
    %cst_11 = arith.constant 0.000000e+00 : f32
    %16 = vector.broadcast %cst_11 : f32 to vector<32x512xf32>
    %17 = arith.maximumf %15, %16 : vector<32x512xf32>
    %c0_12 = arith.constant 0 : index
    %c0_13 = arith.constant 0 : index
    %18 = vector.load %arg6[%c0_12, %c0_13] : memref<32x1xf32, #tpu.memory_space<vmem>>, vector<32x1xf32>
    %19 = vector.broadcast %18 : vector<32x1xf32> to vector<32x512xf32>
    %20 = arith.mulf %14, %19 : vector<32x512xf32>
    %c0_14 = arith.constant 0 : index
    %c0_15 = arith.constant 0 : index
    %21 = vector.load %arg7[%c0_14, %c0_15] : memref<32x1xf32, #tpu.memory_space<vmem>>, vector<32x1xf32>
    %22 = vector.broadcast %21 : vector<32x1xf32> to vector<32x512xf32>
    %23 = arith.mulf %17, %22 : vector<32x512xf32>
    %24 = arith.addf %20, %23 : vector<32x512xf32>
    %cst_16 = arith.constant dense<0.000000e+00> : vector<512xf32>
    %25 = vector.multi_reduction <add>, %24, %cst_16 [0] : vector<32x512xf32> to vector<512xf32>
    %26 = vector.shape_cast %25 : vector<512xf32> to vector<1x512xf32>
    %c0_17 = arith.constant 0 : index
    %c0_18 = arith.constant 0 : index
    %27 = vector.load %arg8[%c0_17, %c0_18] : memref<1x1xf32, #tpu.memory_space<vmem>>, vector<1x1xf32>
    %28 = vector.broadcast %27 : vector<1x1xf32> to vector<1x512xf32>
    %29 = arith.addf %26, %28 : vector<1x512xf32>
    %c0_19 = arith.constant 0 : index
    %c0_20 = arith.constant 0 : index
    %30 = vector.load %arg9[%c0_19, %c0_20] : memref<1x512xf32, #tpu.memory_space<vmem>>, vector<1x512xf32>
    tpu.vector_store %arg9[%c0_19, %c0_20], %29 {strides = array<i32>} : memref<1x512xf32, #tpu.memory_space<vmem>>, vector<1x512xf32>,
    return
  }
  func.func @transform_0(%arg0: i32) -> (i32, i32) {
    %c0_i32 = arith.constant 0 : i32
    %c0_i32_0 = arith.constant 0 : i32
    return %c0_i32, %arg0 : i32, i32
  }
  func.func @transform_1(%arg0: i32) -> (i32, i32) {
    %c0_i32 = arith.constant 0 : i32
    %c0_i32_0 = arith.constant 0 : i32
    %c0_i32_1 = arith.constant 0 : i32
    return %c0_i32, %c0_i32_0 : i32, i32
  }
  func.func @transform_2(%arg0: i32) -> (i32, i32) {
    %c0_i32 = arith.constant 0 : i32
    %c0_i32_0 = arith.constant 0 : i32
    %c0_i32_1 = arith.constant 0 : i32
    return %c0_i32, %c0_i32_0 : i32, i32
  }
  func.func @transform_3(%arg0: i32) -> (i32, i32) {
    %c0_i32 = arith.constant 0 : i32
    %c0_i32_0 = arith.constant 0 : i32
    %c0_i32_1 = arith.constant 0 : i32
    return %c0_i32, %c0_i32_0 : i32, i32
  }
  func.func @transform_4(%arg0: i32) -> (i32, i32) {
    %c0_i32 = arith.constant 0 : i32
    %c0_i32_0 = arith.constant 0 : i32
    %c0_i32_1 = arith.constant 0 : i32
    return %c0_i32, %c0_i32_0 : i32, i32
  }
  func.func @transform_5(%arg0: i32) -> (i32, i32) {
    %c0_i32 = arith.constant 0 : i32
    %c0_i32_0 = arith.constant 0 : i32
    %c0_i32_1 = arith.constant 0 : i32
    return %c0_i32, %c0_i32_0 : i32, i32
  }
  func.func @transform_6(%arg0: i32) -> (i32, i32) {
    %c0_i32 = arith.constant 0 : i32
    %c0_i32_0 = arith.constant 0 : i32
    %c0_i32_1 = arith.constant 0 : i32
    return %c0_i32, %c0_i32_0 : i32, i32
  }
  func.func @transform_7(%arg0: i32) -> (i32, i32) {
    %c0_i32 = arith.constant 0 : i32
    %c0_i32_0 = arith.constant 0 : i32
    %c0_i32_1 = arith.constant 0 : i32
    return %c0_i32, %c0_i32_0 : i32, i32
  }
  func.func @transform_8(%arg0: i32) -> (i32, i32) {
    %c0_i32 = arith.constant 0 : i32
    %c0_i32_0 = arith.constant 0 : i32
    return %c0_i32, %arg0 : i32, i32
  }
}

</mosaic_0001>

<bundles_post_ra>
// kernel: ddpg_critic_forward.1
= control target key start
LH: loop header
LB: loop body
LE: loop exit
PB: predicated region body
PF: predicated region fallthrough
CT: control target
= control target key end

     0   :  { %v824_v1 = vmov 0   ;;  %vm190_vm0 = vcmask 392192   ;;  %vm425_vm1 = vcmask 1043456   ;;  %vm418_vm2 = vcmask 326656   ;;  %s1087_s0 = inlined_call_operand.vmem [shape: bf16[48,512], index: 0, kind: input, shape index: {}]   ;;  %s1088_s7 = inlined_call_operand.<no memory space> [shape: f32[1,1], index: 7, kind: input, shape index: {}]   ;;  %s1089_s1 = inlined_call_operand.vmem [shape: bf16[72,48], index: 1, kind: input, shape index: {}]   ;;  %s1090_s2 = inlined_call_operand.vmem [shape: f32[72,1], index: 2, kind: input, shape index: {}]   ;;  %s1091_s4 = inlined_call_operand.vmem [shape: f32[32,1], index: 4, kind: input, shape index: {}]   ;;  %s1092_s5 = inlined_call_operand.vmem [shape: f32[32,1], index: 5, kind: input, shape index: {}]   ;;  %s1093_s6 = inlined_call_operand.vmem [shape: f32[32,1], index: 6, kind: input, shape index: {}]   ;;  %s1094_s3 = inlined_call_operand.vmem [shape: bf16[32,40], index: 3, kind: input, shape index: {}]   ;;  %s1095_s8 = inlined_call_operand.vmem [shape: f32[1,512], index: 8, kind: output, shape index: {}]  }
   0x1   :  { %v799_v0 = vld [vmem:[%s1087_s0 + $0x4] ss:$16 sps:$4 sm:$0xff]   ;;  %238 = vmatprep.mubr.bf16.mxu0 %v824_v1  ;;  %319 = vmatprep.mubr.bf16.mxu1 %v824_v1  ;;  %v13_v2 = vstv %s1088_s7  ;;  %v801_v3 = vld [vmem:[%s1087_s0 + $0xc] ss:$16 sps:$4 sm:$0xff]   ;;  %v803_v4 = vld [vmem:[%s1087_s0] ss:$16 sps:$4 sm:$0xff]  }
   0x2   :  { %797 = vset.pattern.permute.xlu0 %v824_v1  ;;  %798 = vset.pattern.permute.xlu1 %v824_v1  ;;  %14 = vst [vmem:[#allocation2] sm:$0x1] %v13_v2  ;;  %v804_v5 = vld [vmem:[%s1087_s0 + $0x8] ss:$16 sps:$4 sm:$0xff]   ;;  %v805_v6 = vld [vmem:[%s1087_s0 + $0x24] ss:$16 sps:$4 sm:$0xff]  }
   0x3   :  { %206 = vmatprep.subr.bf16.mxu0 %v799_v0  ;;  %287 = vmatprep.subr.bf16.mxu1 %v801_v3  ;;  %v807_v7 = vld [vmem:[%s1087_s0 + $0x2c] ss:$16 sps:$4 sm:$0xff]   ;;  %v809_v8 = vld [vmem:[%s1087_s0 + $0x20] ss:$16 sps:$4 sm:$0xff]   ;;  %v810_v9 = vld [vmem:[%s1087_s0 + $0x28] ss:$16 sps:$4 sm:$0xff]  }
   0x4   :  { %207 = vmatpush1.bf16.msra.mxu0 %v803_v4  ;;  %288 = vmatpush1.bf16.msra.mxu1 %v804_v5  ;;  %v811_v10 = vld [vmem:[%s1087_s0 + $0x44] ss:$16 sps:$4 sm:$0xff]   ;;  %v813_v11 = vld [vmem:[%s1087_s0 + $0x4c] ss:$16 sps:$4 sm:$0xff]   ;;  %v815_v12 = vld [vmem:[%s1087_s0 + $0x40] ss:$16 sps:$4 sm:$0xff]  }
   0x5   :  { %208 = vmatprep.subr.bf16.mxu0 %v805_v6  ;;  %289 = vmatprep.subr.bf16.mxu1 %v807_v7  ;;  %v816_v13 = vld [vmem:[%s1087_s0 + $0x48] ss:$16 sps:$4 sm:$0xff]   ;;  %v817_v14 = vld [vmem:[%s1089_s1] sm:$0xff]   ;;  %v55_v17 = vld [vmem:[%s1090_s2 + $0x10] sm:$0xff] }
   0x6   :  { %v53_v15 = vld [vmem:[%s1090_s2] sm:$0xff]  ;;  %v54_v16 = vld [vmem:[%s1090_s2 + $0x8] sm:$0xff]  ;;  %74 = vperm.xlu1 %798, %v55_v17   ;;  %v56_v19 = vld [vmem:[%s1090_s2 + $0x18] sm:$0xff] }
   0x7   :  { %64 = vperm.xlu0 %797, %v53_v15   ;;  %v57_v18 = vld [vmem:[%s1090_s2 + $0x20] sm:$0xff]  ;;  %v818_v20 = vld [vmem:[%s1089_s1 + $0x8] sm:$0xff]   ;;  %v59_v21 = vld [vmem:[%s1090_s2 + $0x30] sm:$0xff] }
   0x8   :  { %209 = vmatpush1.bf16.msra.mxu0 %v809_v8  ;;  %290 = vmatpush1.bf16.msra.mxu1 %v810_v9  ;;  %v58_v22 = vld [vmem:[%s1090_s2 + $0x28] sm:$0xff]  ;;  %v384_v24 = vld [vmem:[%s1091_s4] sm:$0xff]  ;;  %v819_v25 = vld [vmem:[%s1089_s1 + $0x10] sm:$0xff]  }
   0x9   :  { %210 = vmatprep.subr.bf16.mxu0 %v811_v10  ;;  %291 = vmatprep.subr.bf16.mxu1 %v813_v11  ;;  %v385_v23 = vld [vmem:[%s1091_s4 + $0x8] sm:$0xff]  ;;  %v386_v26 = vld [vmem:[%s1091_s4 + $0x10] sm:$0xff]  ;;  %v60_v27 = vld [vmem:[%s1090_s2 + $0x38] sm:$0xff] }
   0xa   :  { %79 = vperm.xlu1 %798, %v56_v19   ;;  %v387_v28 = vld [vmem:[%s1091_s4 + $0x18] sm:$0xff]  ;;  %v61_v29 = vld [vmem:[%s1090_s2 + $0x40] sm:$0xff]  ;;  %v577_v31 = vld [vmem:[%s1092_s5 + $0x8] sm:$0xff] }
   0xb   :  { %69 = vperm.xlu0 %797, %v54_v16   ;;  %v820_v30 = vld [vmem:[%s1089_s1 + $0x18] sm:$0xff]   ;;  %v576_v32 = vld [vmem:[%s1092_s5] sm:$0xff]  ;;  %v617_v33 = vld [vmem:[%s1093_s6 + $0x8] sm:$0xff] }
   0xc   :  { %211 = vmatpush1.bf16.msra.mxu0 %v815_v12  ;;  %292 = vmatpush1.bf16.msra.mxu1 %v816_v13  ;;  %v616_v34 = vld [vmem:[%s1093_s6] sm:$0xff]  ;;  %v618_v36 = vld [vmem:[%s1093_s6 + $0x10] sm:$0xff]  ;;  %v619_v38 = vld [vmem:[%s1093_s6 + $0x18] sm:$0xff] }
   0xd   :  { %v821_v35 = vld [vmem:[%s1089_s1 + $0x20] ss:$0 sps:$4 sm:$0xff]   ;;  %v578_v37 = vld [vmem:[%s1092_s5 + $0x10] sm:$0xff]  ;;  %v579_v39 = vld [vmem:[%s1092_s5 + $0x18] sm:$0xff] }
   0xe   :  { %89 = vperm.xlu1 %798, %v58_v22   ;;  %v708_v40 = vld [vmem:[#allocation2] sm:$0x1] }
   0xf   :  { %777 = vmatmul.mubr.msk.bf16.vlgmr.msra.gmra.mrb[0].mxu0 %vm190_vm0, %v817_v14  ;;  %782 = vmatmul.mubr.msk.bf16.vlgmr.msra.gmra.mrb[0].mxu1 %vm190_vm0, %v817_v14 }
  0x10   :  { %248 = vmatprep.mubr.bf16.mxu0 %v824_v1  ;;  %329 = vmatprep.mubr.bf16.mxu1 %v824_v1 }
  0x11   :  { %84 = vperm.xlu0 %797, %v57_v18  }
  0x12   :  { %390 = vperm.xlu1 %798, %v384_v24  }
  0x15   :  { %94 = vperm.xlu0 %797, %v59_v21  }
  0x16   :  { %99 = vperm.xlu1 %798, %v60_v27  }
  0x17   :  { %778 = vmatmul.mubr.msk.bf16.gmra.mrb[4].mxu0 %vm190_vm0, %v818_v20  ;;  %783 = vmatmul.mubr.msk.bf16.gmra.mrb[4].mxu1 %vm190_vm0, %v818_v20 }
  0x18   :  { %258 = vmatprep.mubr.bf16.mxu0 %v824_v1  ;;  %339 = vmatprep.mubr.bf16.mxu1 %v824_v1 }
  0x19   :  { %395 = vperm.xlu0 %797, %v385_v23  }
  0x1a   :  { %104 = vperm.xlu1 %798, %v61_v29  }
  0x1d   :  { %400 = vperm.xlu0 %797, %v386_v26  }
  0x1e   :  { %582 = vperm.xlu1 %798, %v576_v32  }
  0x1f   :  { %779 = vmatmul.mubr.msk.bf16.gmra.mrb[8].mxu0 %vm190_vm0, %v819_v25  ;;  %784 = vmatmul.mubr.msk.bf16.gmra.mrb[8].mxu1 %vm190_vm0, %v819_v25 }
  0x20   :  { %268 = vmatprep.mubr.bf16.mxu0 %v824_v1  ;;  %349 = vmatprep.mubr.bf16.mxu1 %v824_v1 }
  0x21   :  { %405 = vperm.xlu0 %797, %v387_v28  }
  0x22   :  { %622 = vperm.xlu1 %798, %v616_v34  }
  0x25   :  { %587 = vperm.xlu0 %797, %v577_v31  }
  0x26   :  { %592 = vperm.xlu1 %798, %v578_v37  }
  0x27   :  { %780 = vmatmul.mubr.msk.bf16.gmra.mrb[12].mxu0 %vm190_vm0, %v820_v30  ;;  %785 = vmatmul.mubr.msk.bf16.gmra.mrb[12].mxu1 %vm190_vm0, %v820_v30 }
  0x28   :  { %278 = vmatprep.mubr.bf16.mxu0 %v824_v1  ;;  %359 = vmatprep.mubr.bf16.mxu1 %v824_v1 }
  0x29   :  { %627 = vperm.xlu0 %797, %v617_v33  }
  0x2a   :  { %597 = vperm.xlu1 %798, %v579_v39  }
  0x2d   :  { %632 = vperm.xlu0 %797, %v618_v36  }
  0x2e   :  { %711 = vperm.xlu1 %798, %v708_v40  }
  0x2f   :  { %781 = vmatmul.mubr.msk.bf16.gmra.mrb[16].mxu0 %vm190_vm0, %v821_v35  ;;  %786 = vmatmul.mubr.msk.bf16.gmra.mrb[16].mxu1 %vm190_vm0, %v821_v35 }
  0x30   :  { %470 = vmatprep.mubr.bf16.mxu0 %v824_v1  ;;  %523 = vmatprep.mubr.bf16.mxu1 %v824_v1 }
  0x31   :  { %637 = vperm.xlu0 %797, %v619_v38  }
  0x85   :  { %v75_v43 = vpop.permute.xlu1 %74 }
  0x86   :  { %v65_v41 = vpop.permute.xlu0 %64 }
  0x89   :  { %v80_v0 = vpop.permute.xlu1 %79 }
  0x8a   :  { %v70_v42 = vpop.permute.xlu0 %69 }
  0x90   :  { %v85_v22 = vpop.permute.xlu0 %84 }
  0xe2   :  { %v240_v44 = vpop.f32.mrb[0].mxu0  ;;  %v321_v45 = vpop.f32.mrb[0].mxu1 }
  0xe3   :  { %v242_v46 = vpop.f32.mrb[1].mxu0  ;;  %v323_v47 = vpop.f32.mrb[1].mxu1  ;;  %v241_v50 = vadd.f32 %v240_v44, %v65_v41  ;;  %v322_v51 = vadd.f32 %v321_v45, %v65_v41 }
  0xe4   :  { %v244_v48 = vpop.f32.mrb[2].mxu0  ;;  %v325_v49 = vpop.f32.mrb[2].mxu1  ;;  %v243_v56 = vadd.f32 %v242_v46, %v65_v41  ;;  %v324_v57 = vadd.f32 %v323_v47, %v65_v41  ;;  %v822_v41 = vld [vmem:[%s1094_s3] sm:$0xff]  }
  0xe5   :  { %v245_v52 = vadd.f32 %v244_v48, %v70_v42  ;;  %v326_v53 = vadd.f32 %v325_v49, %v70_v42  ;;  %v246_v54 = vpop.f32.mrb[3].mxu0  ;;  %v327_v55 = vpop.f32.mrb[3].mxu1 }
  0xe6   :  { %v247_v58 = vadd.f32 %v246_v54, %v70_v42  ;;  %v328_v59 = vadd.f32 %v327_v55, %v70_v42 }
  0xe7   :  { %v372_v60 = vpack.c.bf16 %v245_v52, %v241_v50  ;;  %v374_v61 = vpack.c.bf16 %v326_v53, %v322_v51  ;;  %v823_v50 = vld [vmem:[%s1094_s3 + $0x8] sm:$0xff]  }
  0xe8   :  { %v373_v62 = vpack.c.bf16 %v247_v58, %v243_v56  ;;  %v375_v63 = vpack.c.bf16 %v328_v59, %v324_v57  ;;  %v95_v59 = vpop.permute.xlu0 %94 }
  0xea   :  { %438 = vmatprep.subr.bf16.mxu0 %v373_v62  ;;  %491 = vmatprep.subr.bf16.mxu1 %v375_v63  ;;  %v250_v2 = vpop.f32.mrb[4].mxu0  ;;  %v331_v3 = vpop.f32.mrb[4].mxu1 }
  0xeb   :  { %439 = vmatpush1.bf16.msra.mxu0 %v372_v60  ;;  %492 = vmatpush1.bf16.msra.mxu1 %v374_v61  ;;  %v252_v4 = vpop.f32.mrb[5].mxu0  ;;  %v333_v5 = vpop.f32.mrb[5].mxu1  ;;  %v251_v8 = vadd.f32 %v250_v2, %v75_v43  ;;  %v332_v9 = vadd.f32 %v331_v3, %v75_v43 }
  0xec   :  { %v254_v6 = vpop.f32.mrb[6].mxu0  ;;  %v335_v7 = vpop.f32.mrb[6].mxu1  ;;  %v253_v14 = vadd.f32 %v252_v4, %v75_v43  ;;  %v334_v15 = vadd.f32 %v333_v5, %v75_v43 }
  0xed   :  { %v255_v10 = vadd.f32 %v254_v6, %v80_v0  ;;  %v336_v11 = vadd.f32 %v335_v7, %v80_v0  ;;  %v256_v12 = vpop.f32.mrb[7].mxu0  ;;  %v337_v13 = vpop.f32.mrb[7].mxu1 }
  0xee   :  { %v257_v16 = vadd.f32 %v256_v12, %v80_v0  ;;  %v338_v17 = vadd.f32 %v337_v13, %v80_v0  ;;  %v1024_v60 = vpop.permute.xlu0 %395 }
  0xef   :  { %v376_v18 = vpack.c.bf16 %v255_v10, %v251_v8  ;;  %v378_v19 = vpack.c.bf16 %v336_v11, %v332_v9 }
  0xf0   :  { %v377_v20 = vpack.c.bf16 %v257_v16, %v253_v14  ;;  %v379_v21 = vpack.c.bf16 %v338_v17, %v334_v15 }
  0xf2   :  { %v260_v23 = vpop.f32.mrb[8].mxu0  ;;  %v341_v24 = vpop.f32.mrb[8].mxu1  ;;  %440 = vmatprep.subr.bf16.mxu0 %v377_v20  ;;  %493 = vmatprep.subr.bf16.mxu1 %v379_v21 }
  0xf3   :  { %v261_v25 = vadd.f32 %v260_v23, %v85_v22  ;;  %v342_v26 = vadd.f32 %v341_v24, %v85_v22  ;;  %v262_v27 = vpop.f32.mrb[9].mxu0  ;;  %v343_v28 = vpop.f32.mrb[9].mxu1  ;;  %441 = vmatpush1.bf16.msra.mxu0 %v376_v18  ;;  %494 = vmatpush1.bf16.msra.mxu1 %v378_v19 }
  0xf4   :  { %v263_v29 = vadd.f32 %v262_v27, %v85_v22  ;;  %v344_v30 = vadd.f32 %v343_v28, %v85_v22  ;;  %v264_v31 = vpop.f32.mrb[10].mxu0  ;;  %v345_v32 = vpop.f32.mrb[10].mxu1 }
  0xf5   :  { %v380_v33 = vpack.c.bf16 %v261_v25, %v261_v25  ;;  %v382_v34 = vpack.c.bf16 %v342_v26, %v342_v26  ;;  %v266_v35 = vpop.f32.mrb[11].mxu0  ;;  %v347_v36 = vpop.f32.mrb[11].mxu1 }
  0xf6   :  { %v381_v37 = vpack.c.bf16 %v263_v29, %v263_v29  ;;  %v383_v38 = vpack.c.bf16 %v344_v30, %v344_v30  ;;  %v1026_v61 = vpop.permute.xlu0 %400 }
  0xf7   :  { %v427_v39 = vsel %vm425_vm1, %v380_v33, 0  ;;  %v433_v40 = vsel %vm425_vm1, %v382_v34, 0 }
  0xf8   :  { %789 = vmatprep.subr.msk.bf16.mxu0 %vm425_vm1, %v381_v37  ;;  %792 = vmatprep.subr.msk.bf16.mxu1 %vm425_vm1, %v383_v38 }
  0xf9   :  { %443 = vmatpush1.bf16.msra.mxu0 %v427_v39  ;;  %496 = vmatpush1.bf16.msra.mxu1 %v433_v40 }
  0xfa   :  { %v270_v42 = vpop.f32.mrb[12].mxu0  ;;  %v351_v43 = vpop.f32.mrb[12].mxu1 }
  0xfb   :  { %v272_v44 = vpop.f32.mrb[13].mxu0  ;;  %v353_v45 = vpop.f32.mrb[13].mxu1  ;;  %v271_v10 = vadd.f32 %v270_v42, %v95_v59  ;;  %v352_v11 = vadd.f32 %v351_v43, %v95_v59 }
  0xfc   :  { %v274_v46 = vpop.f32.mrb[14].mxu0  ;;  %v355_v47 = vpop.f32.mrb[14].mxu1  ;;  %790 = vmatmul.mubr.msk.bf16.vlgmr.msra.gmra.mrb[20].mxu0 %vm418_vm2, %v822_v41  ;;  %793 = vmatmul.mubr.msk.bf16.vlgmr.msra.gmra.mrb[20].mxu1 %vm418_vm2, %v822_v41  ;;  %v273_v12 = vadd.f32 %v272_v44, %v95_v59  ;;  %v354_v13 = vadd.f32 %v353_v45, %v95_v59 }
  0xfd   :  { %v276_v48 = vpop.f32.mrb[15].mxu0  ;;  %v357_v49 = vpop.f32.mrb[15].mxu1  ;;  %480 = vmatprep.mubr.bf16.mxu0 %v824_v1  ;;  %533 = vmatprep.mubr.bf16.mxu1 %v824_v1  ;;  %v564_v27 = vmax.f32 %v271_v10, 0.0  ;;  %v566_v28 = vmax.f32 %v352_v11, 0.0 }
  0xfe   :  { %v90_v1 = vpop.permute.xlu1 %89  ;;  %v1030_v63 = vpop.permute.xlu0 %405  ;;  %v565_v29 = vmax.f32 %v273_v12, 0.0  ;;  %v567_v30 = vmax.f32 %v354_v13, 0.0 }
  0xff   :  { %v265_v5 = vadd.f32 %v264_v31, %v90_v1  ;;  %v346_v6 = vadd.f32 %v345_v32, %v90_v1  ;;  %v267_v8 = vadd.f32 %v266_v35, %v90_v1  ;;  %v348_v9 = vadd.f32 %v347_v36, %v90_v1 }
 0x101   :  { %v560_v19 = vmax.f32 %v265_v5, 0.0  ;;  %v562_v20 = vmax.f32 %v346_v6, 0.0  ;;  %v561_v23 = vmax.f32 %v267_v8, 0.0  ;;  %v563_v24 = vmax.f32 %v348_v9, 0.0 }
 0x102   :  { %v280_v51 = vpop.f32.mrb[16].mxu0  ;;  %v361_v52 = vpop.f32.mrb[16].mxu1 }
 0x103   :  { %v282_v53 = vpop.f32.mrb[17].mxu0  ;;  %v363_v54 = vpop.f32.mrb[17].mxu1 }
 0x104   :  { %791 = vmatmul.mubr.msk.bf16.gmra.mrb[24].mxu0 %vm418_vm2, %v823_v50  ;;  %794 = vmatmul.mubr.msk.bf16.gmra.mrb[24].mxu1 %vm418_vm2, %v823_v50  ;;  %v284_v55 = vpop.f32.mrb[18].mxu0  ;;  %v365_v56 = vpop.f32.mrb[18].mxu1 }
 0x105   :  { %v285_v57 = vpop.f32.mrb[19].mxu0  ;;  %v366_v58 = vpop.f32.mrb[19].mxu1 }
 0x106   :  { %v1028_v62 = vpop.permute.xlu1 %390  ;;  %v1032_v2 = vpop.permute.xlu0 %587 }
 0x10a   :  { %v100_v0 = vpop.permute.xlu1 %99  ;;  %v628_v4 = vpop.permute.xlu0 %627 }
 0x10b   :  { %v275_v14 = vadd.f32 %v274_v46, %v100_v0  ;;  %v356_v15 = vadd.f32 %v355_v47, %v100_v0  ;;  %v277_v16 = vadd.f32 %v276_v48, %v100_v0  ;;  %v358_v17 = vadd.f32 %v357_v49, %v100_v0 }
 0x10c   :  { %v644_v45 = vmul.f32 %v628_v4, %v564_v27  ;;  %v646_v46 = vmul.f32 %v628_v4, %v566_v28  ;;  %v645_v47 = vmul.f32 %v628_v4, %v565_v29  ;;  %v647_v48 = vmul.f32 %v628_v4, %v567_v30 }
 0x10d   :  { %v568_v32 = vmax.f32 %v275_v14, 0.0  ;;  %v570_v33 = vmax.f32 %v356_v15, 0.0  ;;  %v569_v34 = vmax.f32 %v277_v16, 0.0  ;;  %v571_v35 = vmax.f32 %v358_v17, 0.0 }
 0x10e   :  { %v105_v3 = vpop.permute.xlu1 %104  ;;  %v633_v18 = vpop.permute.xlu0 %632 }
 0x10f   :  { %v281_v21 = vadd.f32 %v280_v51, %v105_v3  ;;  %v362_v22 = vadd.f32 %v361_v52, %v105_v3  ;;  %v283_v25 = vadd.f32 %v282_v53, %v105_v3  ;;  %v364_v26 = vadd.f32 %v363_v54, %v105_v3 }
 0x110   :  { %v1036_v49 = vmul.f32 %v633_v18, %v568_v32  ;;  %v1038_v50 = vmul.f32 %v633_v18, %v570_v33  ;;  %v1040_v51 = vmul.f32 %v633_v18, %v569_v34  ;;  %v1042_v52 = vmul.f32 %v633_v18, %v571_v35 }
 0x111   :  { %v572_v38 = vmax.f32 %v281_v21, 0.0  ;;  %v574_v39 = vmax.f32 %v362_v22, 0.0  ;;  %v573_v42 = vmax.f32 %v283_v25, 0.0  ;;  %v575_v43 = vmax.f32 %v364_v26, 0.0 }
 0x112   :  { %v1034_v7 = vpop.permute.xlu1 %582  ;;  %v638_v44 = vpop.permute.xlu0 %637 }
 0x113   :  { %v1044_v55 = vmul.f32 %v638_v44, %v572_v38  ;;  %v1046_v56 = vmul.f32 %v638_v44, %v574_v39  ;;  %v1050_v0 = vmul.f32 %v638_v44, %v573_v42  ;;  %v1052_v3 = vmul.f32 %v638_v44, %v575_v43 }
 0x116   :  { %v623_v31 = vpop.permute.xlu1 %622 }
 0x117   :  { %v640_v36 = vmul.f32 %v623_v31, %v560_v19  ;;  %v642_v37 = vmul.f32 %v623_v31, %v562_v20  ;;  %v641_v40 = vmul.f32 %v623_v31, %v561_v23  ;;  %v643_v41 = vmul.f32 %v623_v31, %v563_v24 }
 0x11a   :  { %v593_v26 = vpop.permute.xlu1 %592 }
 0x1cf   :  { %v472_v53 = vpop.f32.mrb[20].mxu0  ;;  %v525_v54 = vpop.f32.mrb[20].mxu1 }
 0x1d0   :  { %v473_v57 = vadd.f32 %v472_v53, %v1028_v62  ;;  %v526_v58 = vadd.f32 %v525_v54, %v1028_v62  ;;  %v474_v59 = vpop.f32.mrb[21].mxu0  ;;  %v527_v1 = vpop.f32.mrb[21].mxu1 }
 0x1d1   :  { %v475_v4 = vadd.f32 %v474_v59, %v1028_v62  ;;  %v528_v5 = vadd.f32 %v527_v1, %v1028_v62  ;;  %v476_v6 = vpop.f32.mrb[22].mxu0  ;;  %v529_v8 = vpop.f32.mrb[22].mxu1 }
 0x1d2   :  { %v544_v9 = vmax.f32 %v473_v57, 0.0  ;;  %v546_v10 = vmax.f32 %v526_v58, 0.0  ;;  %v477_v11 = vadd.f32 %v476_v6, %v1024_v60  ;;  %v530_v12 = vadd.f32 %v529_v8, %v1024_v60  ;;  %v478_v13 = vpop.f32.mrb[23].mxu0  ;;  %v531_v14 = vpop.f32.mrb[23].mxu1 }
 0x1d3   :  { %v545_v15 = vmax.f32 %v475_v4, 0.0  ;;  %v547_v16 = vmax.f32 %v528_v5, 0.0  ;;  %v479_v17 = vadd.f32 %v478_v13, %v1024_v60  ;;  %v532_v18 = vadd.f32 %v531_v14, %v1024_v60 }
 0x1d4   :  { %v600_v19 = vmul.f32 %v1034_v7, %v544_v9  ;;  %v602_v62 = vmul.f32 %v1034_v7, %v546_v10  ;;  %v548_v20 = vmax.f32 %v477_v11, 0.0  ;;  %v550_v21 = vmax.f32 %v530_v12, 0.0 }
 0x1d5   :  { %v601_v22 = vmul.f32 %v1034_v7, %v545_v15  ;;  %v603_v23 = vmul.f32 %v1034_v7, %v547_v16  ;;  %v549_v24 = vmax.f32 %v479_v17, 0.0  ;;  %v551_v25 = vmax.f32 %v532_v18, 0.0  ;;  %v598_v17 = vpop.permute.xlu1 %597 }
 0x1d6   :  { %v656_v27 = vadd.f32 %v640_v36, %v600_v19  ;;  %v658_v28 = vadd.f32 %v642_v37, %v602_v62  ;;  %v604_v29 = vmul.f32 %v1032_v2, %v548_v20  ;;  %v606_v30 = vmul.f32 %v1032_v2, %v550_v21 }
 0x1d7   :  { %v657_v60 = vadd.f32 %v641_v40, %v601_v22  ;;  %v659_v31 = vadd.f32 %v643_v41, %v603_v23  ;;  %v605_v32 = vmul.f32 %v1032_v2, %v549_v24  ;;  %v607_v33 = vmul.f32 %v1032_v2, %v551_v25  ;;  %v482_v34 = vpop.f32.mrb[24].mxu0  ;;  %v535_v35 = vpop.f32.mrb[24].mxu1 }
 0x1d8   :  { %v660_v38 = vadd.f32 %v644_v45, %v604_v29  ;;  %v662_v39 = vadd.f32 %v646_v46, %v606_v30  ;;  %v483_v7 = vadd.f32 %v482_v34, %v1026_v61  ;;  %v536_v42 = vadd.f32 %v535_v35, %v1026_v61  ;;  %v484_v36 = vpop.f32.mrb[25].mxu0  ;;  %v537_v37 = vpop.f32.mrb[25].mxu1 }
 0x1d9   :  { %v661_v43 = vadd.f32 %v645_v47, %v605_v32  ;;  %v663_v44 = vadd.f32 %v647_v48, %v607_v33  ;;  %v485_v53 = vadd.f32 %v484_v36, %v1026_v61  ;;  %v538_v40 = vadd.f32 %v537_v37, %v1026_v61  ;;  %v486_v41 = vpop.f32.mrb[26].mxu0  ;;  %v539_v54 = vpop.f32.mrb[26].mxu1 }
 0x1da   :  { %v672_v57 = vadd.f32 %v660_v38, %v656_v27  ;;  %v690_v2 = vadd.f32 %v662_v39, %v658_v28  ;;  %v552_v58 = vmax.f32 %v483_v7, 0.0  ;;  %v554_v59 = vmax.f32 %v536_v42, 0.0  ;;  %v488_v45 = vpop.f32.mrb[27].mxu0  ;;  %v541_v46 = vpop.f32.mrb[27].mxu1 }
 0x1db   :  { %v681_v1 = vadd.f32 %v661_v43, %v657_v60  ;;  %v699_v4 = vadd.f32 %v663_v44, %v659_v31  ;;  %v553_v5 = vmax.f32 %v485_v53, 0.0  ;;  %v555_v6 = vmax.f32 %v538_v40, 0.0 }
 0x1dc   :  { %v608_v8 = vmul.f32 %v593_v26, %v552_v58  ;;  %v610_v9 = vmul.f32 %v593_v26, %v554_v59  ;;  %v487_v47 = vadd.f32 %v486_v41, %v1030_v63  ;;  %v540_v48 = vadd.f32 %v539_v54, %v1030_v63  ;;  %v712_v41 = vpop.permute.xlu1 %711 }
 0x1dd   :  { %v609_v10 = vmul.f32 %v593_v26, %v553_v5  ;;  %v611_v61 = vmul.f32 %v593_v26, %v555_v6  ;;  %v489_v11 = vadd.f32 %v488_v45, %v1030_v63  ;;  %v542_v12 = vadd.f32 %v541_v46, %v1030_v63 }
 0x1de   :  { %v664_v13 = vadd.f32 %v1036_v49, %v608_v8  ;;  %v666_v14 = vadd.f32 %v1038_v50, %v610_v9  ;;  %v556_v15 = vmax.f32 %v487_v47, 0.0  ;;  %v558_v16 = vmax.f32 %v540_v48, 0.0 }
 0x1df   :  { %v665_v18 = vadd.f32 %v1040_v51, %v609_v10  ;;  %v667_v19 = vadd.f32 %v1042_v52, %v611_v61  ;;  %v557_v62 = vmax.f32 %v489_v11, 0.0  ;;  %v559_v20 = vmax.f32 %v542_v12, 0.0 }
 0x1e0   :  { %v673_v21 = vadd.f32 %v672_v57, %v664_v13  ;;  %v691_v22 = vadd.f32 %v690_v2, %v666_v14  ;;  %v612_v23 = vmul.f32 %v598_v17, %v556_v15  ;;  %v614_v24 = vmul.f32 %v598_v17, %v558_v16 }
 0x1e1   :  { %v682_v25 = vadd.f32 %v681_v1, %v665_v18  ;;  %v700_v26 = vadd.f32 %v699_v4, %v667_v19  ;;  %v613_v63 = vmul.f32 %v598_v17, %v557_v62  ;;  %v615_v27 = vmul.f32 %v598_v17, %v559_v20 }
 0x1e2   :  { %v668_v49 = vadd.f32 %v1044_v55, %v612_v23  ;;  %v670_v50 = vadd.f32 %v1046_v56, %v614_v24  ;;  %v714_v29 = vlaneseq  ;;  %v825_v37 = vmov 1966171168  }
 0x1e3   :  { %v669_v28 = vadd.f32 %v1050_v0, %v613_v63  ;;  %v671_v51 = vadd.f32 %v1052_v3, %v615_v27  ;;  %v729_v0 = vunpack.c.l.s4 %v825_v37 }
 0x1e4   :  { %v674_v52 = vadd.f32 %v673_v21, %v668_v49  ;;  %v692_v30 = vadd.f32 %v691_v22, %v670_v50  ;;  %v715_v38 = vshrl.u32 %v714_v29, 7  ;;  %vm753_vm3 = vcmp.lt.s32.totalorder %v714_v29, 512 }
 0x1e5   :  { %v683_v60 = vadd.f32 %v682_v25, %v669_v28  ;;  %v701_v31 = vadd.f32 %v700_v26, %v671_v51  ;;  %v730_v59 = vunpack.c.0.s8 %v729_v0 }
 0x1e6   :  { %v675_v32 = vrot.slane %v674_v52, 4  ;;  %v693_v33 = vrot.slane %v692_v30, 4  ;;  %v716_v44 = vsub.s32 0, %v715_v38 }
 0x1e7   :  { %v684_v34 = vrot.slane %v683_v60, 4  ;;  %v702_v35 = vrot.slane %v701_v31, 4  ;;  %v733_v48 = vsub.s32 %v730_v59, %v715_v38 }
 0x1e8   :  { %v676_v39 = vadd.f32 %v675_v32, %v674_v52  ;;  %v694_v7 = vadd.f32 %v693_v33, %v692_v30  ;;  %v717_v1 = vrot.slane %v712_v41, %v716_v44 }
 0x1e9   :  { %v685_v42 = vadd.f32 %v684_v34, %v683_v60  ;;  %v703_v55 = vadd.f32 %v702_v35, %v701_v31 }
 0x1ea   :  { %v677_v36 = vrot.slane %v676_v39, 2  ;;  %v695_v56 = vrot.slane %v694_v7, 2 }
 0x1eb   :  { %v686_v43 = vrot.slane %v685_v42, 2  ;;  %v704_v3 = vrot.slane %v703_v55, 2 }
 0x1ec   :  { %v678_v53 = vadd.f32 %v677_v36, %v676_v39  ;;  %v696_v40 = vadd.f32 %v695_v56, %v694_v7 }
 0x1ed   :  { %v687_v54 = vadd.f32 %v686_v43, %v685_v42  ;;  %v705_v57 = vadd.f32 %v704_v3, %v703_v55 }
 0x1ee   :  { %v679_v2 = vrot.slane %v678_v53, 1  ;;  %v697_v58 = vrot.slane %v696_v40, 1 }
 0x1ef   :  { %v688_v45 = vrot.slane %v687_v54, 1  ;;  %v706_v46 = vrot.slane %v705_v57, 1 }
 0x1f0   :  { %v680_v4 = vadd.f32 %v679_v2, %v678_v53  ;;  %v698_v5 = vadd.f32 %v697_v58, %v696_v40 }
 0x1f1   :  { %v689_v6 = vadd.f32 %v688_v45, %v687_v54  ;;  %v707_v8 = vadd.f32 %v706_v46, %v705_v57 }
 0x1f2   :  { %v718_v9 = vadd.f32 %v717_v1, %v680_v4  ;;  %v720_v47 = vadd.f32 %v717_v1, %v698_v5 }
 0x1f3   :  { %v719_v10 = vadd.f32 %v717_v1, %v689_v6  ;;  %v721_v61 = vadd.f32 %v717_v1, %v707_v8 }
 0x1f5   :  { %v726_v11 = vcombine.low %v718_v9, %v719_v10  ;;  %v727_v12 = vcombine.low %v720_v47, %v721_v61 }
 0x1f7   :  { %v734_v13 = vrot.slane %v726_v11, %v733_v48  ;;  %v741_v14 = vrot.slane %v727_v12, %v733_v48 }
 0x1f9   :  { %v742_v15 = vcombine.low %v734_v13, %v741_v14 }
 0x1fb   :  { %v749_v16 = vrot.slane %v742_v15, %v733_v48 }
 0x1fd   :  { %755 = vst.msk [vmem:[%s1095_s8] sm:$0xf] %vm753_vm3, %v749_v16 }

</bundles_post_ra>
